<compile_context>
chip_gen: v5e
topology: v5e:2x2
jax: 0.10.0
libtpu: 0.0.40
codegen_flags: <defaults>
</compile_context>

<pallas_src>
import functools

import jax
import jax.numpy as jnp
from jax.experimental import pallas as pl
from jax.experimental.pallas import tpu as pltpu


LOG_STD_MIN = -20.0
LOG_STD_MAX = 2.0
HIDDEN = 256


def actor_kernel(x_ref, w1_ref, b1_ref, w2_ref, b2_ref, wh_ref, bh_ref,
                 out_ref, *, action_size):
    """One batch tile: fused 3-matmul MLP with a merged mu/log_std head."""
    cdt = w1_ref.dtype                      # MXU input dtype (f32 or bf16)

    # fc1 + relu  (accumulate in f32, elementwise in f32)
    x = x_ref[...].astype(cdt)
    h1 = jnp.dot(x, w1_ref[...], preferred_element_type=jnp.float32)
    h1 = jnp.maximum(h1 + b1_ref[...], 0.0)

    # fc2 + relu
    h2 = jnp.dot(h1.astype(cdt), w2_ref[...], preferred_element_type=jnp.float32)
    h2 = jnp.maximum(h2 + b2_ref[...], 0.0)

    # fused head: [mu | log_std]  -> single MXU push instead of two
    head = jnp.dot(h2.astype(cdt), wh_ref[...], preferred_element_type=jnp.float32)
    head = head + bh_ref[...]

    # Columns [0, A) are mu (pass through); columns [A, 2A) are log_std
    # (clip then exp).  Using a lane-index mask avoids in-vreg lane slicing.
    col = jax.lax.broadcasted_iota(jnp.int32, head.shape, 1)
    std = jnp.exp(jnp.clip(head, LOG_STD_MIN, LOG_STD_MAX))
    out_ref[...] = jnp.where(col >= action_size, std, head)


def _pick_batch_tile(batch):
    """Largest MXU-friendly tile that divides the batch (256-aligned preferred)."""
    for tb in (2048, 1024, 512, 256, 128, 64, 32, 16, 8):
        if batch % tb == 0:
            return tb
    return batch  # odd tiny batch: single full-extent block


@functools.partial(jax.jit, static_argnames=("batch_tile", "param_dtype"))
def actor_forward(x, params, *, batch_tile=None, param_dtype=jnp.float32):
    batch, state_size = x.shape
    action_size = params["wmu"].shape[1]
    two_a = 2 * action_size

    # Fuse the two tiny heads into one (256, 2A) weight / (1, 2A) bias.
    w1 = params["w1"].astype(param_dtype)
    w2 = params["w2"].astype(param_dtype)
    w_head = jnp.concatenate([params["wmu"], params["wls"]], axis=1).astype(param_dtype)
    b_head = jnp.concatenate([params["bmu"], params["bls"]], axis=1)

    tb = batch_tile if batch_tile is not None else _pick_batch_tile(batch)
    grid = (pl.cdiv(batch, tb),)

    resident = lambda i: (0, 0)              # weights/biases stay in VMEM
    batched = lambda i: (i, 0)               # x / output stream per grid step

    out = pl.pallas_call(
        functools.partial(actor_kernel, action_size=action_size),
        out_shape=jax.ShapeDtypeStruct((batch, two_a), jnp.float32),
        grid=grid,
        in_specs=[
            pl.BlockSpec((tb, state_size), batched),     # x
            pl.BlockSpec((state_size, HIDDEN), resident),  # W1
            pl.BlockSpec((1, HIDDEN), resident),           # b1
            pl.BlockSpec((HIDDEN, HIDDEN), resident),      # W2
            pl.BlockSpec((1, HIDDEN), resident),           # b2
            pl.BlockSpec((HIDDEN, two_a), resident),       # W_head
            pl.BlockSpec((1, two_a), resident),            # b_head
        ],
        out_specs=pl.BlockSpec((tb, two_a), batched),
        compiler_params=pltpu.CompilerParams(
            dimension_semantics=("parallel",),  # megacore sharding on v7x
        ),
    )(x, w1, params["b1"], w2, params["b2"], w_head, b_head)

    mu = out[:, :action_size]
    std = out[:, action_size:]
    return mu, std


def init_actor_params(key, state_size, action_size):
    """Deterministic init mimicking nn.Linear's U(-1/sqrt(fan_in), 1/sqrt(fan_in)).

    Weights are stored (in_features, out_features), i.e. transposed vs. PyTorch,
    so the kernel computes y = x @ W + b directly on the MXU.
    """
    def linear(k, fan_in, fan_out):
        kw, kb = jax.random.split(k)
        bound = 1.0 / jnp.sqrt(jnp.float32(fan_in))
        w = jax.random.uniform(kw, (fan_in, fan_out), jnp.float32, -bound, bound)
        b = jax.random.uniform(kb, (1, fan_out), jnp.float32, -bound, bound)
        return w, b

    k1, k2, k3, k4 = jax.random.split(key, 4)
    w1, b1 = linear(k1, state_size, HIDDEN)
    w2, b2 = linear(k2, HIDDEN, HIDDEN)
    wmu, bmu = linear(k3, HIDDEN, action_size)
    wls, bls = linear(k4, HIDDEN, action_size)
    return dict(w1=w1, b1=b1, w2=w2, b2=b2,
                wmu=wmu, bmu=bmu, wls=wls, bls=bls)


def actor_forward_ref(x, p):
    h1 = jnp.maximum(x @ p["w1"] + p["b1"], 0.0)
    h2 = jnp.maximum(h1 @ p["w2"] + p["b2"], 0.0)
    mu = h2 @ p["wmu"] + p["bmu"]
    ls = jnp.clip(h2 @ p["wls"] + p["bls"], LOG_STD_MIN, LOG_STD_MAX)
    return mu, jnp.exp(ls)


if __name__ == "__main__":
    key = jax.random.PRNGKey(0)
    k_params, k_x1, k_x2 = jax.random.split(key, 3)

    state_size = 16
    action_size = 8
    params = init_actor_params(k_params, state_size, action_size)

    # Small single-tile case.
    batch = 8
    x = jax.random.normal(k_x1, (batch, state_size), jnp.float32)
    mu, std = actor_forward(x, params)
    jax.block_until_ready((mu, std))

    mu_ref, std_ref = actor_forward_ref(x, params)
    assert mu.shape == (batch, action_size) and std.shape == (batch, action_size)
    assert jnp.allclose(mu, mu_ref, atol=1e-5, rtol=1e-5)
    assert jnp.allclose(std, std_ref, atol=1e-5, rtol=1e-5)

    # Multi-grid-step case (exercises the batch grid / pipelining path).
    batch2 = 64
    x2 = jax.random.normal(k_x2, (batch2, state_size), jnp.float32)
    mu2, std2 = actor_forward(x2, params, batch_tile=16)
    jax.block_until_ready((mu2, std2))

    mu2_ref, std2_ref = actor_forward_ref(x2, params)
    assert jnp.allclose(mu2, mu2_ref, atol=1e-5, rtol=1e-5)
    assert jnp.allclose(std2, std2_ref, atol=1e-5, rtol=1e-5)

    print("KERNEL_OK")
</pallas_src>

<mosaic_0001>
module attributes {stable_mosaic.version = 11 : i64} {
  func.func @actor_kernel(%arg0: i32, %arg1: memref<8x16xf32, #tpu.memory_space<vmem>>, %arg2: memref<16x256xf32, #tpu.memory_space<vmem>>, %arg3: memref<1x256xf32, #tpu.memory_space<vmem>>, %arg4: memref<256x256xf32, #tpu.memory_space<vmem>>, %arg5: memref<1x256xf32, #tpu.memory_space<vmem>>, %arg6: memref<256x16xf32, #tpu.memory_space<vmem>>, %arg7: memref<1x16xf32, #tpu.memory_space<vmem>>, %arg8: memref<8x16xf32, #tpu.memory_space<vmem>>) attributes {dimension_semantics = [#tpu.dimension_semantics<parallel>], iteration_bounds = array<i64: 1>, scalar_prefetch = 0 : i64, scratch_operands = 0 : i64, tpu.core_type = #tpu.core_type<tc>, window_params = [{transform_indices = @transform_0, window_bounds = array<i64: 8, 16>}, {pipeline_mode = #tpu.pipeline_mode<synchronous>, transform_indices = @transform_1, window_bounds = array<i64: 16, 256>}, {pipeline_mode = #tpu.pipeline_mode<synchronous>, transform_indices = @transform_2, window_bounds = array<i64: 1, 256>}, {pipeline_mode = #tpu.pipeline_mode<synchronous>, transform_indices = @transform_3, window_bounds = array<i64: 256, 256>}, {pipeline_mode = #tpu.pipeline_mode<synchronous>, transform_indices = @transform_4, window_bounds = array<i64: 1, 256>}, {pipeline_mode = #tpu.pipeline_mode<synchronous>, transform_indices = @transform_5, window_bounds = array<i64: 256, 16>}, {pipeline_mode = #tpu.pipeline_mode<synchronous>, transform_indices = @transform_6, window_bounds = array<i64: 1, 16>}, {transform_indices = @transform_7, window_bounds = array<i64: 8, 16>}]} {
    %c0 = arith.constant 0 : index
    %c0_0 = arith.constant 0 : index
    %0 = vector.load %arg1[%c0, %c0_0] : memref<8x16xf32, #tpu.memory_space<vmem>>, vector<8x16xf32>
    %c0_1 = arith.constant 0 : index
    %c0_2 = arith.constant 0 : index
    %1 = vector.load %arg2[%c0_1, %c0_2] : memref<16x256xf32, #tpu.memory_space<vmem>>, vector<16x256xf32>
    %cst = arith.constant dense<0.000000e+00> : vector<8x256xf32>
    %2 = tpu.matmul %0, %1, %cst {dimension_numbers = #tpu.dot_dimension_numbers<[1], [0], [0], [1], [0, 0, 1, 1], [], []>} : vector<8x16xf32>, vector<16x256xf32>, vector<8x256xf32> -> vector<8x256xf32>
    %c0_3 = arith.constant 0 : index
    %c0_4 = arith.constant 0 : index
    %3 = vector.load %arg3[%c0_3, %c0_4] : memref<1x256xf32, #tpu.memory_space<vmem>>, vector<1x256xf32>
    %4 = vector.broadcast %3 : vector<1x256xf32> to vector<8x256xf32>
    %5 = arith.addf %2, %4 : vector<8x256xf32>
    %cst_5 = arith.constant 0.000000e+00 : f32
    %6 = vector.broadcast %cst_5 : f32 to vector<8x256xf32>
    %7 = arith.maximumf %5, %6 : vector<8x256xf32>
    %c0_6 = arith.constant 0 : index
    %c0_7 = arith.constant 0 : index
    %8 = vector.load %arg4[%c0_6, %c0_7] : memref<256x256xf32, #tpu.memory_space<vmem>>, vector<256x256xf32>
    %cst_8 = arith.constant dense<0.000000e+00> : vector<8x256xf32>
    %9 = tpu.matmul %7, %8, %cst_8 {dimension_numbers = #tpu.dot_dimension_numbers<[1], [0], [0], [1], [0, 0, 1, 1], [], []>} : vector<8x256xf32>, vector<256x256xf32>, vector<8x256xf32> -> vector<8x256xf32>
    %c0_9 = arith.constant 0 : index
    %c0_10 = arith.constant 0 : index
    %10 = vector.load %arg5[%c0_9, %c0_10] : memref<1x256xf32, #tpu.memory_space<vmem>>, vector<1x256xf32>
    %11 = vector.broadcast %10 : vector<1x256xf32> to vector<8x256xf32>
    %12 = arith.addf %9, %11 : vector<8x256xf32>
    %cst_11 = arith.constant 0.000000e+00 : f32
    %13 = vector.broadcast %cst_11 : f32 to vector<8x256xf32>
    %14 = arith.maximumf %12, %13 : vector<8x256xf32>
    %c0_12 = arith.constant 0 : index
    %c0_13 = arith.constant 0 : index
    %15 = vector.load %arg6[%c0_12, %c0_13] : memref<256x16xf32, #tpu.memory_space<vmem>>, vector<256x16xf32>
    %cst_14 = arith.constant dense<0.000000e+00> : vector<8x16xf32>
    %16 = tpu.matmul %14, %15, %cst_14 {dimension_numbers = #tpu.dot_dimension_numbers<[1], [0], [0], [1], [0, 0, 1, 1], [], []>} : vector<8x256xf32>, vector<256x16xf32>, vector<8x16xf32> -> vector<8x16xf32>
    %c0_15 = arith.constant 0 : index
    %c0_16 = arith.constant 0 : index
    %17 = vector.load %arg7[%c0_15, %c0_16] : memref<1x16xf32, #tpu.memory_space<vmem>>, vector<1x16xf32>
    %18 = vector.broadcast %17 : vector<1x16xf32> to vector<8x16xf32>
    %19 = arith.addf %16, %18 : vector<8x16xf32>
    %20 = tpu.iota {dimensions = array<i32: 1>} : vector<8x16xi32>
    %cst_17 = arith.constant -2.000000e+01 : f32
    %cst_18 = arith.constant 2.000000e+00 : f32
    %21 = vector.broadcast %cst_17 : f32 to vector<8x16xf32>
    %22 = arith.maximumf %21, %19 : vector<8x16xf32>
    %23 = vector.broadcast %cst_18 : f32 to vector<8x16xf32>
    %24 = arith.minimumf %23, %22 : vector<8x16xf32>
    %25 = math.exp %24 : vector<8x16xf32>
    %c8_i32 = arith.constant 8 : i32
    %26 = vector.broadcast %c8_i32 : i32 to vector<8x16xi32>
    %27 = arith.cmpi sge, %20, %26 : vector<8x16xi32>
    %28 = arith.select %27, %25, %19 : vector<8x16xi1>, vector<8x16xf32>
    %c0_19 = arith.constant 0 : index
    %c0_20 = arith.constant 0 : index
    %29 = vector.load %arg8[%c0_19, %c0_20] : memref<8x16xf32, #tpu.memory_space<vmem>>, vector<8x16xf32>
    tpu.vector_store %arg8[%c0_19, %c0_20], %28 {strides = array<i32>} : memref<8x16xf32, #tpu.memory_space<vmem>>, vector<8x16xf32>,
    return
  }
  func.func @transform_0(%arg0: i32) -> (i32, i32) {
    %c0_i32 = arith.constant 0 : i32
    %c0_i32_0 = arith.constant 0 : i32
    return %arg0, %c0_i32 : i32, i32
  }
  func.func @transform_1(%arg0: i32) -> (i32, i32) {
    %c0_i32 = arith.constant 0 : i32
    %c0_i32_0 = arith.constant 0 : i32
    %c0_i32_1 = arith.constant 0 : i32
    return %c0_i32, %c0_i32_0 : i32, i32
  }
  func.func @transform_2(%arg0: i32) -> (i32, i32) {
    %c0_i32 = arith.constant 0 : i32
    %c0_i32_0 = arith.constant 0 : i32
    %c0_i32_1 = arith.constant 0 : i32
    return %c0_i32, %c0_i32_0 : i32, i32
  }
  func.func @transform_3(%arg0: i32) -> (i32, i32) {
    %c0_i32 = arith.constant 0 : i32
    %c0_i32_0 = arith.constant 0 : i32
    %c0_i32_1 = arith.constant 0 : i32
    return %c0_i32, %c0_i32_0 : i32, i32
  }
  func.func @transform_4(%arg0: i32) -> (i32, i32) {
    %c0_i32 = arith.constant 0 : i32
    %c0_i32_0 = arith.constant 0 : i32
    %c0_i32_1 = arith.constant 0 : i32
    return %c0_i32, %c0_i32_0 : i32, i32
  }
  func.func @transform_5(%arg0: i32) -> (i32, i32) {
    %c0_i32 = arith.constant 0 : i32
    %c0_i32_0 = arith.constant 0 : i32
    %c0_i32_1 = arith.constant 0 : i32
    return %c0_i32, %c0_i32_0 : i32, i32
  }
  func.func @transform_6(%arg0: i32) -> (i32, i32) {
    %c0_i32 = arith.constant 0 : i32
    %c0_i32_0 = arith.constant 0 : i32
    %c0_i32_1 = arith.constant 0 : i32
    return %c0_i32, %c0_i32_0 : i32, i32
  }
  func.func @transform_7(%arg0: i32) -> (i32, i32) {
    %c0_i32 = arith.constant 0 : i32
    %c0_i32_0 = arith.constant 0 : i32
    return %arg0, %c0_i32 : i32, i32
  }
}

</mosaic_0001>

<bundles_post_ra>
// kernel: actor_forward.1
= control target key start
LH: loop header
LB: loop body
LE: loop exit
PB: predicated region body
PF: predicated region fallthrough
CT: control target
= control target key end

     0   :  { %12 = vsyncpa [#allocation3], 0  ;;  %s375_s27 = smov [#allocation2]   ;;  %s376_s29 = smov 256   ;;  %s547_s0 = inlined_call_operand.vmem [shape: f32[8,16], index: 0, kind: input, shape index: {}]   ;;  %s548_s1 = inlined_call_operand.vmem [shape: f32[16,256], index: 1, kind: input, shape index: {}]   ;;  %s549_s2 = inlined_call_operand.vmem [shape: f32[1,256], index: 2, kind: input, shape index: {}]   ;;  %s550_s3 = inlined_call_operand.hbm [shape: f32[256,256], index: 3, kind: input, shape index: {}]   ;;  %s551_s4 = inlined_call_operand.vmem [shape: f32[1,256], index: 4, kind: input, shape index: {}]   ;;  %s552_s5 = inlined_call_operand.vmem [shape: f32[256,16], index: 5, kind: input, shape index: {}]   ;;  %s553_s6 = inlined_call_operand.vmem [shape: f32[1,16], index: 6, kind: input, shape index: {}]   ;;  %s554_s7 = inlined_call_operand.vmem [shape: f32[8,16], index: 7, kind: output, shape index: {}]  }
   0x1   :  { %s23_s26 = sshll.u32 %s550_s3, 4  ;;  %s25_s28 = sshll.u32 %s375_s27, 4  ;;  %s24_s26 = int_to_ptr.hbm [resolvable:$true] %s23_s26  ;;  %s26_s28 = int_to_ptr.vmem [resolvable:$true] %s25_s28 }
   0x2   :  { %s377_s30 = smov 16  }
   0x3   :  { %31 = dma.hbm_to_vmem [thread:$0]  %s24_s26, 8192, %s26_s28, [#allocation3], %s376_s29, %s376_s29, %s377_s30  }
   0x4   :  { %373 = dma.done.wait [#allocation3], 8192  }
   0x5   :  { %374 = vsyncadd [#allocation3], 4294959104  ;;  %v45_v0 = vld [vmem:[%s548_s1 + $0x10] sm:$0xff]  ;;  %v43_v1 = vld [vmem:[%s548_s1] sm:$0xff]  ;;  %vm53_vm0 = vcmask 130048  }
   0x6   :  { %v46_v2 = vld [vmem:[%s548_s1 + $0x18] sm:$0xff]  ;;  %71 = vmatpush.msra.mxu0 %v45_v0  ;;  %v42_v3 = vld [vmem:[%s547_s0] sm:$0xff]  ;;  %v44_v4 = vld [vmem:[%s548_s1 + $0x8] sm:$0xff] }
   0x7   :  { %91 = vmatpush.msra.mxu1 %v46_v2  ;;  %v129_v5 = vld [vmem:[#allocation2 + $0xf0] sm:$0xff]  ;;  %v130_v6 = vld [vmem:[#allocation2 + $0xf8] sm:$0xff]  ;;  %v127_v7 = vld [vmem:[#allocation2 + $0xe0] sm:$0xff] }
   0x8   :  { %169 = vmatpush.msra.mxu2 %v129_v5  ;;  %72 = vmatpush.msra.mxu0 %v43_v1  ;;  %v161_v8 = vld [vmem:[#allocation2 + $0x1f0] sm:$0xff]  ;;  %v162_v9 = vld [vmem:[#allocation2 + $0x1f8] sm:$0xff]  ;;  %v128_v10 = vld [vmem:[#allocation2 + $0xe8] sm:$0xff] }
   0x9   :  { %92 = vmatpush.msra.mxu1 %v44_v4  ;;  %341 = vmatmul.msk.f32.vlgmr.msra.gmra.mxu0 %vm53_vm0, %v42_v3  ;;  %v125_v11 = vld [vmem:[#allocation2 + $0xd0] sm:$0xff]  ;;  %v159_v12 = vld [vmem:[#allocation2 + $0x1e0] sm:$0xff]  ;;  %v160_v13 = vld [vmem:[#allocation2 + $0x1e8] sm:$0xff] }
   0xa   :  { %342 = vmatmul.msk.f32.vlgmr.msra.gmra.mxu1 %vm53_vm0, %v42_v3  ;;  %209 = vmatpush.msrb.mxu0 %v130_v6  ;;  %v126_v14 = vld [vmem:[#allocation2 + $0xd8] sm:$0xff]  ;;  %v123_v15 = vld [vmem:[#allocation2 + $0xc0] sm:$0xff]  ;;  %v157_v16 = vld [vmem:[#allocation2 + $0x1d0] sm:$0xff] }
   0xb   :  { %170 = vmatpush.msra.mxu2 %v127_v7  ;;  %189 = vmatpush.msra.mxu3 %v161_v8  ;;  %v158_v17 = vld [vmem:[#allocation2 + $0x1d8] sm:$0xff]  ;;  %v124_v18 = vld [vmem:[#allocation2 + $0xc8] sm:$0xff]  ;;  %v121_v19 = vld [vmem:[#allocation2 + $0xb0] sm:$0xff] }
   0xc   :  { %229 = vmatpush.msrb.mxu1 %v162_v9  ;;  %210 = vmatpush.msrb.mxu0 %v128_v10  ;;  %v155_v20 = vld [vmem:[#allocation2 + $0x1c0] sm:$0xff]  ;;  %v156_v21 = vld [vmem:[#allocation2 + $0x1c8] sm:$0xff]  ;;  %v122_v22 = vld [vmem:[#allocation2 + $0xb8] sm:$0xff] }
   0xd   :  { %171 = vmatpush.msra.mxu2 %v125_v11  ;;  %190 = vmatpush.msra.mxu3 %v159_v12  ;;  %v119_v23 = vld [vmem:[#allocation2 + $0xa0] sm:$0xff]  ;;  %v153_v24 = vld [vmem:[#allocation2 + $0x1b0] sm:$0xff]  ;;  %v154_v25 = vld [vmem:[#allocation2 + $0x1b8] sm:$0xff] }
   0xe   :  { %230 = vmatpush.msrb.mxu1 %v160_v13  ;;  %211 = vmatpush.msrb.mxu0 %v126_v14  ;;  %v120_v26 = vld [vmem:[#allocation2 + $0xa8] sm:$0xff]  ;;  %v117_v27 = vld [vmem:[#allocation2 + $0x90] sm:$0xff]  ;;  %v151_v28 = vld [vmem:[#allocation2 + $0x1a0] sm:$0xff] }
   0xf   :  { %172 = vmatpush.msra.mxu2 %v123_v15  ;;  %191 = vmatpush.msra.mxu3 %v157_v16  ;;  %v152_v29 = vld [vmem:[#allocation2 + $0x1a8] sm:$0xff]  ;;  %v118_v30 = vld [vmem:[#allocation2 + $0x98] sm:$0xff]  ;;  %v115_v31 = vld [vmem:[#allocation2 + $0x80] sm:$0xff] }
  0x10   :  { %231 = vmatpush.msrb.mxu1 %v158_v17  ;;  %212 = vmatpush.msrb.mxu0 %v124_v18  ;;  %v149_v32 = vld [vmem:[#allocation2 + $0x190] sm:$0xff]  ;;  %v150_v33 = vld [vmem:[#allocation2 + $0x198] sm:$0xff]  ;;  %v116_v34 = vld [vmem:[#allocation2 + $0x88] sm:$0xff] }
  0x11   :  { %173 = vmatpush.msra.mxu2 %v121_v19  ;;  %192 = vmatpush.msra.mxu3 %v155_v20  ;;  %v113_v35 = vld [vmem:[#allocation2 + $0x70] sm:$0xff]  ;;  %v147_v36 = vld [vmem:[#allocation2 + $0x180] sm:$0xff]  ;;  %v148_v37 = vld [vmem:[#allocation2 + $0x188] sm:$0xff] }
  0x12   :  { %232 = vmatpush.msrb.mxu1 %v156_v21  ;;  %213 = vmatpush.msrb.mxu0 %v122_v22  ;;  %v114_v38 = vld [vmem:[#allocation2 + $0x78] sm:$0xff]  ;;  %v111_v39 = vld [vmem:[#allocation2 + $0x60] sm:$0xff]  ;;  %v145_v40 = vld [vmem:[#allocation2 + $0x170] sm:$0xff] }
  0x13   :  { %174 = vmatpush.msra.mxu2 %v119_v23  ;;  %193 = vmatpush.msra.mxu3 %v153_v24  ;;  %v146_v41 = vld [vmem:[#allocation2 + $0x178] sm:$0xff]  ;;  %v112_v42 = vld [vmem:[#allocation2 + $0x68] sm:$0xff]  ;;  %v109_v43 = vld [vmem:[#allocation2 + $0x50] sm:$0xff] }
  0x14   :  { %233 = vmatpush.msrb.mxu1 %v154_v25  ;;  %214 = vmatpush.msrb.mxu0 %v120_v26  ;;  %v143_v44 = vld [vmem:[#allocation2 + $0x160] sm:$0xff]  ;;  %v144_v45 = vld [vmem:[#allocation2 + $0x168] sm:$0xff]  ;;  %v110_v46 = vld [vmem:[#allocation2 + $0x58] sm:$0xff] }
  0x15   :  { %175 = vmatpush.msra.mxu2 %v117_v27  ;;  %194 = vmatpush.msra.mxu3 %v151_v28  ;;  %v107_v47 = vld [vmem:[#allocation2 + $0x40] sm:$0xff]  ;;  %v141_v48 = vld [vmem:[#allocation2 + $0x150] sm:$0xff]  ;;  %v142_v49 = vld [vmem:[#allocation2 + $0x158] sm:$0xff] }
  0x16   :  { %234 = vmatpush.msrb.mxu1 %v152_v29  ;;  %215 = vmatpush.msrb.mxu0 %v118_v30  ;;  %v108_v50 = vld [vmem:[#allocation2 + $0x48] sm:$0xff]  ;;  %v105_v51 = vld [vmem:[#allocation2 + $0x30] sm:$0xff]  ;;  %v139_v52 = vld [vmem:[#allocation2 + $0x140] sm:$0xff] }
  0x17   :  { %176 = vmatpush.msra.mxu2 %v115_v31  ;;  %195 = vmatpush.msra.mxu3 %v149_v32  ;;  %v140_v53 = vld [vmem:[#allocation2 + $0x148] sm:$0xff]  ;;  %v106_v54 = vld [vmem:[#allocation2 + $0x38] sm:$0xff]  ;;  %v103_v55 = vld [vmem:[#allocation2 + $0x20] sm:$0xff] }
  0x18   :  { %235 = vmatpush.msrb.mxu1 %v150_v33  ;;  %216 = vmatpush.msrb.mxu0 %v116_v34  ;;  %v137_v56 = vld [vmem:[#allocation2 + $0x130] sm:$0xff]  ;;  %v104_v57 = vld [vmem:[#allocation2 + $0x28] sm:$0xff]  ;;  %v138_v58 = vld [vmem:[#allocation2 + $0x138] sm:$0xff] }
  0x19   :  { %177 = vmatpush.msra.mxu2 %v113_v35  ;;  %196 = vmatpush.msra.mxu3 %v147_v36  ;;  %v101_v59 = vld [vmem:[#allocation2 + $0x10] sm:$0xff]  ;;  %v135_v60 = vld [vmem:[#allocation2 + $0x120] sm:$0xff]  ;;  %v102_v61 = vld [vmem:[#allocation2 + $0x18] sm:$0xff] }
  0x1a   :  { %236 = vmatpush.msrb.mxu1 %v148_v37  ;;  %217 = vmatpush.msrb.mxu0 %v114_v38  ;;  %v136_v62 = vld [vmem:[#allocation2 + $0x128] sm:$0xff]  ;;  %v99_v63 = vld [vmem:[#allocation2] sm:$0xff]  ;;  %v133_v0 = vld [vmem:[#allocation2 + $0x110] sm:$0xff] }
  0x1b   :  { %178 = vmatpush.msra.mxu2 %v111_v39  ;;  %197 = vmatpush.msra.mxu3 %v145_v40  ;;  %v100_v1 = vld [vmem:[#allocation2 + $0x8] sm:$0xff]  ;;  %v134_v2 = vld [vmem:[#allocation2 + $0x118] sm:$0xff]  ;;  %v131_v3 = vld [vmem:[#allocation2 + $0x100] sm:$0xff] }
  0x1c   :  { %237 = vmatpush.msrb.mxu1 %v146_v41  ;;  %218 = vmatpush.msrb.mxu0 %v112_v42  ;;  %v132_v4 = vld [vmem:[#allocation2 + $0x108] sm:$0xff]  ;;  %v282_v5 = vld [vmem:[%s552_s5 + $0xf8] sm:$0xff]  ;;  %v281_v6 = vld [vmem:[%s552_s5 + $0xf0] sm:$0xff] }
  0x1d   :  { %179 = vmatpush.msra.mxu2 %v109_v43  ;;  %198 = vmatpush.msra.mxu3 %v143_v44  ;;  %v266_v7 = vld [vmem:[%s552_s5 + $0x78] sm:$0xff]  ;;  %v265_v8 = vld [vmem:[%s552_s5 + $0x70] sm:$0xff]  ;;  %v280_v9 = vld [vmem:[%s552_s5 + $0xe8] sm:$0xff] }
  0x1e   :  { %238 = vmatpush.msrb.mxu1 %v144_v45  ;;  %219 = vmatpush.msrb.mxu0 %v110_v46  ;;  %v264_v10 = vld [vmem:[%s552_s5 + $0x68] sm:$0xff]  ;;  %v279_v11 = vld [vmem:[%s552_s5 + $0xe0] sm:$0xff]  ;;  %v278_v13 = vld [vmem:[%s552_s5 + $0xd8] sm:$0xff] }
  0x1f   :  { %180 = vmatpush.msra.mxu2 %v107_v47  ;;  %199 = vmatpush.msra.mxu3 %v141_v48  ;;  %v263_v12 = vld [vmem:[%s552_s5 + $0x60] sm:$0xff]  ;;  %v262_v14 = vld [vmem:[%s552_s5 + $0x58] sm:$0xff]  ;;  %v277_v15 = vld [vmem:[%s552_s5 + $0xd0] sm:$0xff] }
  0x20   :  { %239 = vmatpush.msrb.mxu1 %v142_v49  ;;  %220 = vmatpush.msrb.mxu0 %v108_v50  ;;  %v261_v16 = vld [vmem:[%s552_s5 + $0x50] sm:$0xff]  ;;  %v276_v17 = vld [vmem:[%s552_s5 + $0xc8] sm:$0xff]  ;;  %v275_v19 = vld [vmem:[%s552_s5 + $0xc0] sm:$0xff] }
  0x21   :  { %181 = vmatpush.msra.mxu2 %v105_v51  ;;  %200 = vmatpush.msra.mxu3 %v139_v52  ;;  %v260_v18 = vld [vmem:[%s552_s5 + $0x48] sm:$0xff]  ;;  %v259_v20 = vld [vmem:[%s552_s5 + $0x40] sm:$0xff]  ;;  %v274_v21 = vld [vmem:[%s552_s5 + $0xb8] sm:$0xff] }
  0x22   :  { %240 = vmatpush.msrb.mxu1 %v140_v53  ;;  %221 = vmatpush.msrb.mxu0 %v106_v54  ;;  %v258_v22 = vld [vmem:[%s552_s5 + $0x38] sm:$0xff]  ;;  %v273_v23 = vld [vmem:[%s552_s5 + $0xb0] sm:$0xff]  ;;  %v272_v24 = vld [vmem:[%s552_s5 + $0xa8] sm:$0xff] }
  0x23   :  { %182 = vmatpush.msra.mxu2 %v103_v55  ;;  %201 = vmatpush.msra.mxu3 %v137_v56  ;;  %v47_v25 = vld [vmem:[%s549_s2] sm:$0x3]  ;;  %v257_v35 = vld [vmem:[%s552_s5 + $0x30] sm:$0xff]  ;;  %v270_v36 = vld [vmem:[%s552_s5 + $0x98] sm:$0xff] }
  0x24   :  { %222 = vmatpush.msrb.mxu0 %v104_v57  ;;  %241 = vmatpush.msrb.mxu1 %v138_v58  ;;  %v271_v26 = vld [vmem:[%s552_s5 + $0xa0] sm:$0xff]  ;;  %v49_v27 = vperm.slane %v47_v25, 0  ;;  %v50_v28 = vperm.slane %v47_v25, 1  ;;  %v256_v37 = vld [vmem:[%s552_s5 + $0x28] sm:$0xff]  ;;  %v269_v38 = vld [vmem:[%s552_s5 + $0x90] sm:$0xff] }
  0x25   :  { %183 = vmatpush.msra.mxu2 %v101_v59  ;;  %202 = vmatpush.msra.mxu3 %v135_v60  ;;  %v255_v39 = vld [vmem:[%s552_s5 + $0x20] sm:$0xff]  ;;  %v268_v40 = vld [vmem:[%s552_s5 + $0x88] sm:$0xff]  ;;  %v254_v41 = vld [vmem:[%s552_s5 + $0x18] sm:$0xff] }
  0x26   :  { %223 = vmatpush.msrb.mxu0 %v102_v61  ;;  %242 = vmatpush.msrb.mxu1 %v136_v62  ;;  %v267_v42 = vld [vmem:[%s552_s5 + $0x80] sm:$0xff]  ;;  %v253_v43 = vld [vmem:[%s552_s5 + $0x10] sm:$0xff]  ;;  %v252_v44 = vld [vmem:[%s552_s5 + $0x8] sm:$0xff] }
  0x27   :  { %184 = vmatpush.msra.mxu2 %v99_v63  ;;  %203 = vmatpush.msra.mxu3 %v133_v0  ;;  %v251_v45 = vld [vmem:[%s552_s5] sm:$0xff] }
  0x28   :  { %224 = vmatpush.msrb.mxu0 %v100_v1  ;;  %243 = vmatpush.msrb.mxu1 %v134_v2  ;;  %v163_v46 = vld [vmem:[%s551_s4] sm:$0x3]  ;;  %v327_v1 = vlaneseq }
  0x29   :  { %204 = vmatpush.msra.mxu3 %v131_v3  ;;  %287 = vmatpush.msrb.mxu2 %v266_v7  ;;  %v166_v47 = vperm.slane %v163_v46, 1  ;;  %v165_v52 = vperm.slane %v163_v46, 0  ;;  %v346_v59 = vld [vmem:[%s553_s6] ss:$0 sm:$0xff] }
  0x2a   :  { %244 = vmatpush.msrb.mxu1 %v132_v4  ;;  %v328_v4 = vand.u32 127, %v327_v1 }
  0x2b   :  { %307 = vmatpush.msrb.mxu3 %v282_v5  ;;  %288 = vmatpush.msrb.mxu2 %v265_v8 }
  0x2c   :  { %vm333_vm1 = vcmp.ge.s32.totalorder %v328_v4, 8 }
  0x2d   :  { %308 = vmatpush.msrb.mxu3 %v281_v6  ;;  %289 = vmatpush.msrb.mxu2 %v264_v10 }
  0x2f   :  { %309 = vmatpush.msrb.mxu3 %v280_v9  ;;  %290 = vmatpush.msrb.mxu2 %v263_v12 }
  0x31   :  { %310 = vmatpush.msrb.mxu3 %v279_v11  ;;  %291 = vmatpush.msrb.mxu2 %v262_v14 }
  0x33   :  { %311 = vmatpush.msrb.mxu3 %v278_v13  ;;  %292 = vmatpush.msrb.mxu2 %v261_v16 }
  0x35   :  { %312 = vmatpush.msrb.mxu3 %v277_v15  ;;  %293 = vmatpush.msrb.mxu2 %v260_v18 }
  0x37   :  { %313 = vmatpush.msrb.mxu3 %v276_v17  ;;  %294 = vmatpush.msrb.mxu2 %v259_v20 }
  0x39   :  { %314 = vmatpush.msrb.mxu3 %v275_v19  ;;  %295 = vmatpush.msrb.mxu2 %v258_v22 }
  0x3b   :  { %315 = vmatpush.msrb.mxu3 %v274_v21  ;;  %296 = vmatpush.msrb.mxu2 %v257_v35 }
  0x3d   :  { %316 = vmatpush.msrb.mxu3 %v273_v23  ;;  %297 = vmatpush.msrb.mxu2 %v256_v37 }
  0x3f   :  { %317 = vmatpush.msrb.mxu3 %v272_v24  ;;  %298 = vmatpush.msrb.mxu2 %v255_v39 }
  0x41   :  { %318 = vmatpush.msrb.mxu3 %v271_v26  ;;  %299 = vmatpush.msrb.mxu2 %v254_v41 }
  0x43   :  { %319 = vmatpush.msrb.mxu3 %v270_v36  ;;  %300 = vmatpush.msrb.mxu2 %v253_v43 }
  0x45   :  { %320 = vmatpush.msrb.mxu3 %v269_v38  ;;  %301 = vmatpush.msrb.mxu2 %v252_v44 }
  0x47   :  { %321 = vmatpush.msrb.mxu3 %v268_v40  ;;  %302 = vmatpush.msrb.mxu2 %v251_v45 }
  0x49   :  { %322 = vmatpush.msrb.mxu3 %v267_v42 }
  0x86   :  { %v74_v29 = vpop.f32.mrf.mxu0 }
  0x87   :  { %v94_v30 = vpop.f32.mrf.mxu1  ;;  %v75_v31 = vadd.f32 %v74_v29, %v49_v27 }
  0x88   :  { %v95_v32 = vadd.f32 %v94_v30, %v50_v28 }
  0x89   :  { %v97_v33 = vmax.f32 %v75_v31, 0.0 }
  0x8a   :  { %v98_v34 = vmax.f32 %v95_v32, 0.0 }
  0x8b   :  { %185 = vmatmul.f32.vlgmr.msra.gmra.mxu2 %v97_v33  ;;  %225 = vmatmul.f32.vlgmr.msrb.gmra.mxu0 %v97_v33 }
  0x8c   :  { %205 = vmatmul.f32.vlgmr.msra.gmra.mxu3 %v98_v34  ;;  %245 = vmatmul.f32.vlgmr.msrb.gmra.mxu1 %v98_v34 }
 0x108   :  { %v226_v48 = vpop.f32.mrf.mxu0 }
 0x109   :  { %v227_v49 = vadd.f32 %v226_v48, %v166_v47  ;;  %v246_v50 = vpop.f32.mrf.mxu1 }
 0x10b   :  { %v247_v51 = vadd.f32 %v246_v50, %v227_v49 }
 0x10d   :  { %v250_v53 = vmax.f32 %v247_v51, 0.0 }
 0x10e   :  { %v186_v54 = vpop.f32.mrf.mxu2 }
 0x10f   :  { %v187_v55 = vadd.f32 %v186_v54, %v165_v52  ;;  %323 = vmatmul.f32.vlgmr.msrb.gmra.mxu3 %v250_v53  ;;  %v206_v56 = vpop.f32.mrf.mxu3 }
 0x111   :  { %v207_v57 = vadd.f32 %v206_v56, %v187_v55 }
 0x113   :  { %v249_v58 = vmax.f32 %v207_v57, 0.0 }
 0x115   :  { %303 = vmatmul.f32.vlgmr.msrb.gmra.mxu2 %v249_v58 }
 0x192   :  { %v324_v62 = vpop.f32.mrf.mxu3 }
 0x198   :  { %v304_v60 = vpop.f32.mrf.mxu2 }
 0x199   :  { %v305_v61 = vadd.f32 %v346_v59, %v304_v60 }
 0x19b   :  { %v325_v63 = vadd.f32 %v324_v62, %v305_v61 }
 0x19d   :  { %v329_v0 = vmax.f32 %v325_v63, -20.0 }
 0x19f   :  { %v330_v2 = vmin.f32 %v329_v0, 2.0 }
 0x1a1   :  { %v331_v3 = vmul.f32 1.442695, %v330_v2 }
 0x1a3   :  { %347 = vpow2.f32 %v331_v3 }
 0x1a9   :  { %v348_v5 = vpop.eup %347 }
 0x1aa   :  { %v334_v6 = vsel %vm333_vm1, %v348_v5, %v325_v63 }
 0x1ab   :  { %335 = vst.msk [vmem:[%s554_s7] sm:$0xff] %vm53_vm0, %v334_v6 }
 0x1ac   :  { %340 = vsyncpa [#allocation3], 1 }

</bundles_post_ra>
